<compile_context>
chip_gen: v6e
topology: v6e:2x2x1
jax: 0.10.0
libtpu: 0.0.40
codegen_flags: <defaults>
</compile_context>

<pallas_src>
import functools

import jax
import jax.numpy as jnp
from jax.experimental import pallas as pl
from jax.experimental.pallas import tpu as pltpu

KH = KW = 3
EPS = 1e-5          # nn.BatchNorm2d default
TILE_M = 1024       # flattened (padded) spatial positions per grid step


def _make_conv_bn_pass1_kernel(tm, wp, d, cin, cout):
    """conv (9 taps fused into one matmul) + bias + ReLU + per-tile BN sums."""

    def kernel(body_ref, halo_ref, w_ref, b_ref, mask_ref, act_ref, stats_ref, stg):
        # Gather the 9 dilated taps into ONE (KH*KW*Cin, tm) MXU operand.  Each
        # tap is the tile's column window shifted by a static amount; columns
        # past the tile body come from the pre-gathered halo block.
        for kh in range(KH):
            for kw in range(KW):
                t = kh * KW + kw
                s = kh * d * wp + kw * d          # static column shift of this tap
                r0, r1 = t * cin, (t + 1) * cin
                w1 = max(tm - s, 0)               # columns taken from the body block
                if w1 > 0:
                    stg[r0:r1, 0:w1] = body_ref[:, s:s + w1]
                if w1 < tm:
                    h0 = max(s - tm, 0)
                    stg[r0:r1, w1:tm] = halo_ref[:, h0:h0 + (tm - w1)]

        # Single fused K = 9*Cin matmul; bf16 operands, f32 accumulation on MXU.
        acc = jnp.dot(w_ref[...], stg[...], preferred_element_type=jnp.float32)
        act = jnp.maximum(acc + b_ref[...], 0.0)           # conv bias + ReLU, f32
        act_ref[...] = act                                 # lane-dense (Cout, tm) store

        # BatchNorm partial statistics; the mask zeroes padded / out-of-image
        # columns so the global mean/var only use the real N*H*W pixels.
        m = mask_ref[...]                                  # (1, tm) f32 in {0, 1}
        am = act * m
        ssum = jnp.sum(am, axis=1, keepdims=True)          # (Cout, 1)
        ssq = jnp.sum(am * act, axis=1, keepdims=True)     # (Cout, 1)
        lane = jax.lax.broadcasted_iota(jnp.int32, (cout, 128), 1)
        stats_ref[...] = jnp.where(lane == 0, ssum,
                                   jnp.where(lane == 1, ssq, 0.0))

    return kernel


@functools.partial(jax.jit, static_argnames=("dilation",))
def dilated_conv_forward(x_nchw, weight, bias, gamma, beta, dilation=1):
    """Forward of `dilated_conv` (dropout_rate=0). x_nchw: (N, Cin, H, W) f32."""
    N, Cin, H, W = x_nchw.shape
    Cout = weight.shape[0]
    d = int(dilation)
    Hp, Wp = H + 2 * d, W + 2 * d
    M_real = N * Hp * Wp                 # padded spatial positions (conv computed here)
    halo = 2 * d * (Wp + 1)              # max tap shift (kh = kw = 2)

    # Tile sizing: big tiles amortize per-step overhead; shrink for very large
    # channel counts so the f32 (Cout, tm) block + bf16 staging stay small.
    tm = TILE_M
    while tm > 256 and (Cout * tm * 4 + KH * KW * Cin * tm * 2) > (2 << 20):
        tm //= 2
    n_tiles = (M_real + tm - 1) // tm
    if n_tiles > 1 and n_tiles % 2 == 1:
        n_tiles += 1                     # even tile count -> even v7x megacore split
    M = n_tiles * tm
    halo_p = ((halo + 127) // 128) * 128

    # ---- cheap JAX layout plumbing (input materialized once, channel-major) ------
    # XT[c, n*Hp*Wp + h*Wp + w] = x_padded[n, c, h, w]
    xp = jnp.pad(x_nchw, ((0, 0), (0, 0), (d, d), (d, d)))
    xt = jnp.transpose(xp, (1, 0, 2, 3)).reshape(Cin, M_real).astype(jnp.bfloat16)
    xt = jnp.pad(xt, ((0, 0), (0, M + halo_p - M_real)))
    body = xt[:, :M]
    # Per-tile halo = first `halo_p` columns past each tile (<~10% of the input
    # re-read, instead of overlapping windows / manual exposed DMA).
    col = (jnp.arange(n_tiles) * tm + tm)[:, None] + jnp.arange(halo_p)[None, :]
    halo_arr = xt[:, col].reshape(Cin, n_tiles * halo_p)

    # Tap-major, channel-minor flattened weights: (Cout, 9*Cin) bf16.
    w_flat = jnp.transpose(weight, (0, 2, 3, 1)).reshape(Cout, KH * KW * Cin)
    w_flat = w_flat.astype(jnp.bfloat16)
    b_col = bias.reshape(Cout, 1).astype(jnp.float32)

    # Validity mask over flat positions: real output iff h < H, w < W, pos < M_real.
    valid = (jnp.arange(Hp) < H)[:, None] & (jnp.arange(Wp) < W)[None, :]
    mask = jnp.broadcast_to(valid[None], (N, Hp, Wp)).reshape(M_real)
    mask = jnp.pad(mask, (0, M - M_real)).astype(jnp.float32).reshape(1, M)

    # ---- pass 1: conv + bias + ReLU + BN partial sums (auto-pipelined) -----------
    kernel = _make_conv_bn_pass1_kernel(tm, Wp, d, Cin, Cout)
    flops = 2 * M * (KH * KW * Cin) * Cout
    bytes_acc = ((body.size + halo_arr.size) * 2 + M * Cout * 4 + M * 4
                 + w_flat.size * 2 + Cout * 4 + n_tiles * 128 * Cout * 4)
    act, stats = pl.pallas_call(
        kernel,
        out_shape=(jax.ShapeDtypeStruct((Cout, M), jnp.float32),
                   jax.ShapeDtypeStruct((Cout, n_tiles * 128), jnp.float32)),
        grid=(n_tiles,),
        in_specs=[
            pl.BlockSpec((Cin, tm), lambda j: (0, j)),                 # tile body
            pl.BlockSpec((Cin, halo_p), lambda j: (0, j)),             # tile halo
            pl.BlockSpec((Cout, KH * KW * Cin), lambda j: (0, 0)),     # fused weights
            pl.BlockSpec((Cout, 1), lambda j: (0, 0)),                 # conv bias
            pl.BlockSpec((1, tm), lambda j: (0, j)),                   # validity mask
        ],
        out_specs=(
            pl.BlockSpec((Cout, tm), lambda j: (0, j)),                # activations
            pl.BlockSpec((Cout, 128), lambda j: (0, j)),               # [sum | sumsq]
        ),
        scratch_shapes=[pltpu.VMEM((KH * KW * Cin, tm), jnp.bfloat16)],
        compiler_params=pltpu.CompilerParams(
            dimension_semantics=("parallel",)),
        cost_estimate=pl.CostEstimate(flops=flops, transcendentals=0,
                                      bytes_accessed=bytes_acc),
    )(body, halo_arr, w_flat, b_col, mask)

    # ---- tiny reduction + BN scale/shift folding (plain JAX) ---------------------
    count = N * H * W
    st = stats.reshape(Cout, n_tiles, 128)
    ssum = jnp.sum(st[:, :, 0], axis=1)
    ssq = jnp.sum(st[:, :, 1], axis=1)
    mean = ssum / count
    var = jnp.maximum(ssq / count - mean * mean, 0.0)      # E[x^2]-E[x]^2, clamped
    inv = jax.lax.rsqrt(var + EPS)
    scale = gamma.astype(jnp.float32) * inv
    shift = beta.astype(jnp.float32) - mean * scale
    # TODO(synk): BatchNorm2d running_mean/running_var momentum updates are not
    # emitted; add them if the surrounding training loop consumes those buffers.

    # ---- epilogue: FMA fused by XLA into the final slice + NCHW relayout ---------
    y = act * scale[:, None] + shift[:, None]              # (Cout, M)
    y = y[:, :M_real].reshape(Cout, N, Hp, Wp)[:, :, :H, :W]
    return jnp.transpose(y, (1, 0, 2, 3))                  # (N, Cout, H, W)


def _reference(x, weight, bias, gamma, beta, d):
    conv = jax.lax.conv_general_dilated(
        x, weight, window_strides=(1, 1), padding=[(d, d), (d, d)],
        rhs_dilation=(d, d), dimension_numbers=("NCHW", "OIHW", "NCHW"))
    conv = conv + bias[None, :, None, None]
    a = jnp.maximum(conv, 0.0)
    mean = jnp.mean(a, axis=(0, 2, 3), keepdims=True)
    var = jnp.mean((a - mean) ** 2, axis=(0, 2, 3), keepdims=True)
    y = (a - mean) * jax.lax.rsqrt(var + EPS)
    return y * gamma[None, :, None, None] + beta[None, :, None, None]


if __name__ == "__main__":
    key = jax.random.PRNGKey(0)
    k1, k2, k3 = jax.random.split(key, 3)

    # Small shapes consistent with the module: NCHW input, 3x3 dilated conv.
    N, Cin, H, W = 2, 4, 16, 16
    Cout = 8
    dilation = 2

    x = jax.random.normal(k1, (N, Cin, H, W), jnp.float32)

    # Deterministic parameter init (Conv2d-style uniform bounds; BN gamma=1, beta=0).
    fan_in = Cin * KH * KW
    bound = 1.0 / (fan_in ** 0.5)
    weight = jax.random.uniform(k2, (Cout, Cin, KH, KW), jnp.float32, -bound, bound)
    bias = jax.random.uniform(k3, (Cout,), jnp.float32, -bound, bound)
    gamma = jnp.ones((Cout,), jnp.float32)
    beta = jnp.zeros((Cout,), jnp.float32)

    out = jax.block_until_ready(
        dilated_conv_forward(x, weight, bias, gamma, beta, dilation=dilation))

    # The kernel feeds the MXU bf16 operands (f32 accumulation), so compare against
    # a reference built from the same bf16-rounded conv inputs.
    x_q = x.astype(jnp.bfloat16).astype(jnp.float32)
    w_q = weight.astype(jnp.bfloat16).astype(jnp.float32)
    ref = _reference(x_q, w_q, bias, gamma, beta, dilation)

    assert out.shape == (N, Cout, H, W), out.shape
    err = float(jnp.max(jnp.abs(out - ref)))
    assert jnp.allclose(out, ref, atol=2e-3, rtol=2e-3), err
    print("KERNEL_OK")
</pallas_src>

<mosaic_0001>
module attributes {stable_mosaic.version = 11 : i64} {
  func.func @kernel(%arg0: i32, %arg1: memref<4x1024xbf16, #tpu.memory_space<vmem>>, %arg2: memref<4x128xbf16, #tpu.memory_space<vmem>>, %arg3: memref<8x36xbf16, #tpu.memory_space<vmem>>, %arg4: memref<8x1xf32, #tpu.memory_space<vmem>>, %arg5: memref<1x1024xf32, #tpu.memory_space<vmem>>, %arg6: memref<8x1024xf32, #tpu.memory_space<vmem>>, %arg7: memref<8x128xf32, #tpu.memory_space<vmem>>, %arg8: memref<36x1024xbf16, #tpu.memory_space<vmem>>) attributes {dimension_semantics = [#tpu.dimension_semantics<parallel>], iteration_bounds = array<i64: 1>, scalar_prefetch = 0 : i64, scratch_operands = 1 : i64, tpu.core_type = #tpu.core_type<tc>, window_params = [{transform_indices = @transform_0, window_bounds = array<i64: 4, 1024>}, {transform_indices = @transform_1, window_bounds = array<i64: 4, 128>}, {pipeline_mode = #tpu.pipeline_mode<synchronous>, transform_indices = @transform_2, window_bounds = array<i64: 8, 36>}, {pipeline_mode = #tpu.pipeline_mode<synchronous>, transform_indices = @transform_3, window_bounds = array<i64: 8, 1>}, {transform_indices = @transform_4, window_bounds = array<i64: 1, 1024>}, {transform_indices = @transform_5, window_bounds = array<i64: 8, 1024>}, {transform_indices = @transform_6, window_bounds = array<i64: 8, 128>}]} {
    %c0 = arith.constant 0 : index
    %c0_0 = arith.constant 0 : index
    %0 = vector.load %arg1[%c0, %c0_0] : memref<4x1024xbf16, #tpu.memory_space<vmem>>, vector<4x1024xbf16>
    %c0_1 = arith.constant 0 : index
    %c0_2 = arith.constant 0 : index
    %1 = vector.load %arg8[%c0_1, %c0_2] : memref<36x1024xbf16, #tpu.memory_space<vmem>>, vector<4x1024xbf16>
    tpu.vector_store %arg8[%c0_1, %c0_2], %0 {strides = array<i32>} : memref<36x1024xbf16, #tpu.memory_space<vmem>>, vector<4x1024xbf16>,
    %c0_3 = arith.constant 0 : index
    %c2 = arith.constant 2 : index
    %2 = vector.load %arg1[%c0_3, %c2] : memref<4x1024xbf16, #tpu.memory_space<vmem>>, vector<4x1022xbf16>
    %c4 = arith.constant 4 : index
    %c0_4 = arith.constant 0 : index
    %3 = vector.load %arg8[%c4, %c0_4] : memref<36x1024xbf16, #tpu.memory_space<vmem>>, vector<4x1022xbf16>
    tpu.vector_store %arg8[%c4, %c0_4], %2 {strides = array<i32>} : memref<36x1024xbf16, #tpu.memory_space<vmem>>, vector<4x1022xbf16>,
    %c0_5 = arith.constant 0 : index
    %c0_6 = arith.constant 0 : index
    %4 = vector.load %arg2[%c0_5, %c0_6] : memref<4x128xbf16, #tpu.memory_space<vmem>>, vector<4x2xbf16>
    %c4_7 = arith.constant 4 : index
    %c1022 = arith.constant 1022 : index
    %5 = vector.load %arg8[%c4_7, %c1022] : memref<36x1024xbf16, #tpu.memory_space<vmem>>, vector<4x2xbf16>
    tpu.vector_store %arg8[%c4_7, %c1022], %4 {strides = array<i32>} : memref<36x1024xbf16, #tpu.memory_space<vmem>>, vector<4x2xbf16>,
    %c0_8 = arith.constant 0 : index
    %c4_9 = arith.constant 4 : index
    %6 = vector.load %arg1[%c0_8, %c4_9] : memref<4x1024xbf16, #tpu.memory_space<vmem>>, vector<4x1020xbf16>
    %c8 = arith.constant 8 : index
    %c0_10 = arith.constant 0 : index
    %7 = vector.load %arg8[%c8, %c0_10] : memref<36x1024xbf16, #tpu.memory_space<vmem>>, vector<4x1020xbf16>
    tpu.vector_store %arg8[%c8, %c0_10], %6 {strides = array<i32>} : memref<36x1024xbf16, #tpu.memory_space<vmem>>, vector<4x1020xbf16>,
    %c0_11 = arith.constant 0 : index
    %c0_12 = arith.constant 0 : index
    %8 = vector.load %arg2[%c0_11, %c0_12] : memref<4x128xbf16, #tpu.memory_space<vmem>>, vector<4x4xbf16>
    %c8_13 = arith.constant 8 : index
    %c1020 = arith.constant 1020 : index
    %9 = vector.load %arg8[%c8_13, %c1020] : memref<36x1024xbf16, #tpu.memory_space<vmem>>, vector<4x4xbf16>
    tpu.vector_store %arg8[%c8_13, %c1020], %8 {strides = array<i32>} : memref<36x1024xbf16, #tpu.memory_space<vmem>>, vector<4x4xbf16>,
    %c0_14 = arith.constant 0 : index
    %c40 = arith.constant 40 : index
    %10 = vector.load %arg1[%c0_14, %c40] : memref<4x1024xbf16, #tpu.memory_space<vmem>>, vector<4x984xbf16>
    %c12 = arith.constant 12 : index
    %c0_15 = arith.constant 0 : index
    %11 = vector.load %arg8[%c12, %c0_15] : memref<36x1024xbf16, #tpu.memory_space<vmem>>, vector<4x984xbf16>
    tpu.vector_store %arg8[%c12, %c0_15], %10 {strides = array<i32>} : memref<36x1024xbf16, #tpu.memory_space<vmem>>, vector<4x984xbf16>,
    %c0_16 = arith.constant 0 : index
    %c0_17 = arith.constant 0 : index
    %12 = vector.load %arg2[%c0_16, %c0_17] : memref<4x128xbf16, #tpu.memory_space<vmem>>, vector<4x40xbf16>
    %c12_18 = arith.constant 12 : index
    %c984 = arith.constant 984 : index
    %13 = vector.load %arg8[%c12_18, %c984] : memref<36x1024xbf16, #tpu.memory_space<vmem>>, vector<4x40xbf16>
    tpu.vector_store %arg8[%c12_18, %c984], %12 {strides = array<i32>} : memref<36x1024xbf16, #tpu.memory_space<vmem>>, vector<4x40xbf16>,
    %c0_19 = arith.constant 0 : index
    %c42 = arith.constant 42 : index
    %14 = vector.load %arg1[%c0_19, %c42] : memref<4x1024xbf16, #tpu.memory_space<vmem>>, vector<4x982xbf16>
    %c16 = arith.constant 16 : index
    %c0_20 = arith.constant 0 : index
    %15 = vector.load %arg8[%c16, %c0_20] : memref<36x1024xbf16, #tpu.memory_space<vmem>>, vector<4x982xbf16>
    tpu.vector_store %arg8[%c16, %c0_20], %14 {strides = array<i32>} : memref<36x1024xbf16, #tpu.memory_space<vmem>>, vector<4x982xbf16>,
    %c0_21 = arith.constant 0 : index
    %c0_22 = arith.constant 0 : index
    %16 = vector.load %arg2[%c0_21, %c0_22] : memref<4x128xbf16, #tpu.memory_space<vmem>>, vector<4x42xbf16>
    %c16_23 = arith.constant 16 : index
    %c982 = arith.constant 982 : index
    %17 = vector.load %arg8[%c16_23, %c982] : memref<36x1024xbf16, #tpu.memory_space<vmem>>, vector<4x42xbf16>
    tpu.vector_store %arg8[%c16_23, %c982], %16 {strides = array<i32>} : memref<36x1024xbf16, #tpu.memory_space<vmem>>, vector<4x42xbf16>,
    %c0_24 = arith.constant 0 : index
    %c44 = arith.constant 44 : index
    %18 = vector.load %arg1[%c0_24, %c44] : memref<4x1024xbf16, #tpu.memory_space<vmem>>, vector<4x980xbf16>
    %c20 = arith.constant 20 : index
    %c0_25 = arith.constant 0 : index
    %19 = vector.load %arg8[%c20, %c0_25] : memref<36x1024xbf16, #tpu.memory_space<vmem>>, vector<4x980xbf16>
    tpu.vector_store %arg8[%c20, %c0_25], %18 {strides = array<i32>} : memref<36x1024xbf16, #tpu.memory_space<vmem>>, vector<4x980xbf16>,
    %c0_26 = arith.constant 0 : index
    %c0_27 = arith.constant 0 : index
    %20 = vector.load %arg2[%c0_26, %c0_27] : memref<4x128xbf16, #tpu.memory_space<vmem>>, vector<4x44xbf16>
    %c20_28 = arith.constant 20 : index
    %c980 = arith.constant 980 : index
    %21 = vector.load %arg8[%c20_28, %c980] : memref<36x1024xbf16, #tpu.memory_space<vmem>>, vector<4x44xbf16>
    tpu.vector_store %arg8[%c20_28, %c980], %20 {strides = array<i32>} : memref<36x1024xbf16, #tpu.memory_space<vmem>>, vector<4x44xbf16>,
    %c0_29 = arith.constant 0 : index
    %c80 = arith.constant 80 : index
    %22 = vector.load %arg1[%c0_29, %c80] : memref<4x1024xbf16, #tpu.memory_space<vmem>>, vector<4x944xbf16>
    %c24 = arith.constant 24 : index
    %c0_30 = arith.constant 0 : index
    %23 = vector.load %arg8[%c24, %c0_30] : memref<36x1024xbf16, #tpu.memory_space<vmem>>, vector<4x944xbf16>
    tpu.vector_store %arg8[%c24, %c0_30], %22 {strides = array<i32>} : memref<36x1024xbf16, #tpu.memory_space<vmem>>, vector<4x944xbf16>,
    %c0_31 = arith.constant 0 : index
    %c0_32 = arith.constant 0 : index
    %24 = vector.load %arg2[%c0_31, %c0_32] : memref<4x128xbf16, #tpu.memory_space<vmem>>, vector<4x80xbf16>
    %c24_33 = arith.constant 24 : index
    %c944 = arith.constant 944 : index
    %25 = vector.load %arg8[%c24_33, %c944] : memref<36x1024xbf16, #tpu.memory_space<vmem>>, vector<4x80xbf16>
    tpu.vector_store %arg8[%c24_33, %c944], %24 {strides = array<i32>} : memref<36x1024xbf16, #tpu.memory_space<vmem>>, vector<4x80xbf16>,
    %c0_34 = arith.constant 0 : index
    %c82 = arith.constant 82 : index
    %26 = vector.load %arg1[%c0_34, %c82] : memref<4x1024xbf16, #tpu.memory_space<vmem>>, vector<4x942xbf16>
    %c28 = arith.constant 28 : index
    %c0_35 = arith.constant 0 : index
    %27 = vector.load %arg8[%c28, %c0_35] : memref<36x1024xbf16, #tpu.memory_space<vmem>>, vector<4x942xbf16>
    tpu.vector_store %arg8[%c28, %c0_35], %26 {strides = array<i32>} : memref<36x1024xbf16, #tpu.memory_space<vmem>>, vector<4x942xbf16>,
    %c0_36 = arith.constant 0 : index
    %c0_37 = arith.constant 0 : index
    %28 = vector.load %arg2[%c0_36, %c0_37] : memref<4x128xbf16, #tpu.memory_space<vmem>>, vector<4x82xbf16>
    %c28_38 = arith.constant 28 : index
    %c942 = arith.constant 942 : index
    %29 = vector.load %arg8[%c28_38, %c942] : memref<36x1024xbf16, #tpu.memory_space<vmem>>, vector<4x82xbf16>
    tpu.vector_store %arg8[%c28_38, %c942], %28 {strides = array<i32>} : memref<36x1024xbf16, #tpu.memory_space<vmem>>, vector<4x82xbf16>,
    %c0_39 = arith.constant 0 : index
    %c84 = arith.constant 84 : index
    %30 = vector.load %arg1[%c0_39, %c84] : memref<4x1024xbf16, #tpu.memory_space<vmem>>, vector<4x940xbf16>
    %c32 = arith.constant 32 : index
    %c0_40 = arith.constant 0 : index
    %31 = vector.load %arg8[%c32, %c0_40] : memref<36x1024xbf16, #tpu.memory_space<vmem>>, vector<4x940xbf16>
    tpu.vector_store %arg8[%c32, %c0_40], %30 {strides = array<i32>} : memref<36x1024xbf16, #tpu.memory_space<vmem>>, vector<4x940xbf16>,
    %c0_41 = arith.constant 0 : index
    %c0_42 = arith.constant 0 : index
    %32 = vector.load %arg2[%c0_41, %c0_42] : memref<4x128xbf16, #tpu.memory_space<vmem>>, vector<4x84xbf16>
    %c32_43 = arith.constant 32 : index
    %c940 = arith.constant 940 : index
    %33 = vector.load %arg8[%c32_43, %c940] : memref<36x1024xbf16, #tpu.memory_space<vmem>>, vector<4x84xbf16>
    tpu.vector_store %arg8[%c32_43, %c940], %32 {strides = array<i32>} : memref<36x1024xbf16, #tpu.memory_space<vmem>>, vector<4x84xbf16>,
    %c0_44 = arith.constant 0 : index
    %c0_45 = arith.constant 0 : index
    %34 = vector.load %arg3[%c0_44, %c0_45] : memref<8x36xbf16, #tpu.memory_space<vmem>>, vector<8x36xbf16>
    %c0_46 = arith.constant 0 : index
    %c0_47 = arith.constant 0 : index
    %35 = vector.load %arg8[%c0_46, %c0_47] : memref<36x1024xbf16, #tpu.memory_space<vmem>>, vector<36x1024xbf16>
    %cst = arith.constant dense<0.000000e+00> : vector<8x1024xf32>
    %36 = tpu.matmul %34, %35, %cst {dimension_numbers = #tpu.dot_dimension_numbers<[1], [0], [0], [1], [0, 0, 1, 1], [], []>} : vector<8x36xbf16>, vector<36x1024xbf16>, vector<8x1024xf32> -> vector<8x1024xf32>
    %c0_48 = arith.constant 0 : index
    %c0_49 = arith.constant 0 : index
    %37 = vector.load %arg4[%c0_48, %c0_49] : memref<8x1xf32, #tpu.memory_space<vmem>>, vector<8x1xf32>
    %38 = vector.broadcast %37 : vector<8x1xf32> to vector<8x1024xf32>
    %39 = arith.addf %36, %38 : vector<8x1024xf32>
    %cst_50 = arith.constant 0.000000e+00 : f32
    %40 = vector.broadcast %cst_50 : f32 to vector<8x1024xf32>
    %41 = arith.maximumf %39, %40 : vector<8x1024xf32>
    %c0_51 = arith.constant 0 : index
    %c0_52 = arith.constant 0 : index
    %42 = vector.load %arg6[%c0_51, %c0_52] : memref<8x1024xf32, #tpu.memory_space<vmem>>, vector<8x1024xf32>
    tpu.vector_store %arg6[%c0_51, %c0_52], %41 {strides = array<i32>} : memref<8x1024xf32, #tpu.memory_space<vmem>>, vector<8x1024xf32>,
    %c0_53 = arith.constant 0 : index
    %c0_54 = arith.constant 0 : index
    %43 = vector.load %arg5[%c0_53, %c0_54] : memref<1x1024xf32, #tpu.memory_space<vmem>>, vector<1x1024xf32>
    %44 = vector.broadcast %43 : vector<1x1024xf32> to vector<8x1024xf32>
    %45 = arith.mulf %41, %44 : vector<8x1024xf32>
    %cst_55 = arith.constant dense<0.000000e+00> : vector<8xf32>
    %46 = vector.multi_reduction <add>, %45, %cst_55 [1] : vector<8x1024xf32> to vector<8xf32>
    %47 = vector.shape_cast %46 : vector<8xf32> to vector<8x1xf32>
    %48 = arith.mulf %45, %41 : vector<8x1024xf32>
    %cst_56 = arith.constant dense<0.000000e+00> : vector<8xf32>
    %49 = vector.multi_reduction <add>, %48, %cst_56 [1] : vector<8x1024xf32> to vector<8xf32>
    %50 = vector.shape_cast %49 : vector<8xf32> to vector<8x1xf32>
    %51 = tpu.iota {dimensions = array<i32: 1>} : vector<8x128xi32>
    %c0_i32 = arith.constant 0 : i32
    %52 = vector.broadcast %c0_i32 : i32 to vector<8x128xi32>
    %53 = arith.cmpi eq, %51, %52 : vector<8x128xi32>
    %c1_i32 = arith.constant 1 : i32
    %54 = vector.broadcast %c1_i32 : i32 to vector<8x128xi32>
    %55 = arith.cmpi eq, %51, %54 : vector<8x128xi32>
    %cst_57 = arith.constant 0.000000e+00 : f32
    %56 = vector.shape_cast %50 : vector<8x1xf32> to vector<8x1xf32>
    %57 = vector.broadcast %56 : vector<8x1xf32> to vector<8x128xf32>
    %58 = vector.broadcast %cst_57 : f32 to vector<8x128xf32>
    %59 = arith.select %55, %57, %58 : vector<8x128xi1>, vector<8x128xf32>
    %60 = vector.shape_cast %47 : vector<8x1xf32> to vector<8x1xf32>
    %61 = vector.broadcast %60 : vector<8x1xf32> to vector<8x128xf32>
    %62 = arith.select %53, %61, %59 : vector<8x128xi1>, vector<8x128xf32>
    %c0_58 = arith.constant 0 : index
    %c0_59 = arith.constant 0 : index
    %63 = vector.load %arg7[%c0_58, %c0_59] : memref<8x128xf32, #tpu.memory_space<vmem>>, vector<8x128xf32>
    tpu.vector_store %arg7[%c0_58, %c0_59], %62 {strides = array<i32>} : memref<8x128xf32, #tpu.memory_space<vmem>>, vector<8x128xf32>,
    return
  }
  func.func @transform_0(%arg0: i32) -> (i32, i32) {
    %c0_i32 = arith.constant 0 : i32
    %c0_i32_0 = arith.constant 0 : i32
    return %c0_i32, %arg0 : i32, i32
  }
  func.func @transform_1(%arg0: i32) -> (i32, i32) {
    %c0_i32 = arith.constant 0 : i32
    %c0_i32_0 = arith.constant 0 : i32
    return %c0_i32, %arg0 : i32, i32
  }
  func.func @transform_2(%arg0: i32) -> (i32, i32) {
    %c0_i32 = arith.constant 0 : i32
    %c0_i32_0 = arith.constant 0 : i32
    %c0_i32_1 = arith.constant 0 : i32
    return %c0_i32, %c0_i32_0 : i32, i32
  }
  func.func @transform_3(%arg0: i32) -> (i32, i32) {
    %c0_i32 = arith.constant 0 : i32
    %c0_i32_0 = arith.constant 0 : i32
    %c0_i32_1 = arith.constant 0 : i32
    return %c0_i32, %c0_i32_0 : i32, i32
  }
  func.func @transform_4(%arg0: i32) -> (i32, i32) {
    %c0_i32 = arith.constant 0 : i32
    %c0_i32_0 = arith.constant 0 : i32
    return %c0_i32, %arg0 : i32, i32
  }
  func.func @transform_5(%arg0: i32) -> (i32, i32) {
    %c0_i32 = arith.constant 0 : i32
    %c0_i32_0 = arith.constant 0 : i32
    return %c0_i32, %arg0 : i32, i32
  }
  func.func @transform_6(%arg0: i32) -> (i32, i32) {
    %c0_i32 = arith.constant 0 : i32
    %c0_i32_0 = arith.constant 0 : i32
    return %c0_i32, %arg0 : i32, i32
  }
}

</mosaic_0001>

<bundles_post_ra>
// kernel: dilated_conv_forward.1
= control target key start
LH: loop header
LB: loop body
LE: loop exit
PB: predicated region body
PF: predicated region fallthrough
CT: control target
= control target key end

     0   :  { %v73_v0 = vlaneseq  ;;  %v1187_v1 = vmov 1983009808   ;;  %s1188_s8 = smov 44   ;;  %s1189_s9 = smov 86   ;;  %v1196_v26 = vmov 0   ;;  %vm111_vm0 = vcmask 1043456   ;;  %s1595_s0 = inlined_call_operand.vmem [shape: bf16[4,1024], index: 0, kind: input, shape index: {}]   ;;  %s1596_s1 = inlined_call_operand.vmem [shape: bf16[4,128], index: 1, kind: input, shape index: {}]   ;;  %s1597_s3 = inlined_call_operand.vmem [shape: f32[8,1], index: 3, kind: input, shape index: {}]   ;;  %s1598_s2 = inlined_call_operand.vmem [shape: bf16[8,36], index: 2, kind: input, shape index: {}]   ;;  %s1599_s5 = inlined_call_operand.vmem [shape: f32[8,1024], index: 5, kind: output, shape index: {0}]   ;;  %s1600_s4 = inlined_call_operand.vmem [shape: f32[1,1024], index: 4, kind: input, shape index: {}]   ;;  %s1601_s6 = inlined_call_operand.vmem [shape: f32[8,128], index: 6, kind: output, shape index: {1}]  }
   0x1   :  { %v71_v2 = vunpack.c.l.s4 %v1187_v1  ;;  %v618_v3 = vld [vmem:[%s1595_s0] sm:$0xff]  ;;  %v619_v4 = vld [vmem:[%s1595_s0 + $0x8] sm:$0xff]  ;;  %s1190_s10 = smov 84   ;;  %s1191_s11 = smov 48   ;;  %883 = vmatprep.mubr.bf16.mxu0 %v1196_v26  ;;  %924 = vmatprep.mubr.bf16.mxu1 %v1196_v26  ;;  %vm665_vm1 = vcmask 359424   ;;  %vm351_vm2 = vcmask 703488  }
   0x2   :  { %v1239_v5 = vshrl.u32 %v73_v0, 7  ;;  %v622_v6 = vcombine.high %v618_v3, %v618_v3  ;;  %1122 = vst.sshfl [vmem:[#allocation2] sm:$0xf pattern:$0x76325410] %v618_v3  ;;  %v637_v8 = vcombine.high %v619_v4, %v619_v4  ;;  %v386_v15 = vcombine.low %v618_v3, %v618_v3  ;;  %s1192_s12 = smov 46   ;;  %1172 = vset.pattern.permute.xlu0 %v1196_v26 }
   0x3   :  { %1124 = vst.sshfl [vmem:[#allocation2 + $0x10] sm:$0xf pattern:$0x76325410] %v619_v4  ;;  %v72_v7 = vunpack.c.0.s8 %v71_v2  ;;  %s1193_s13 = smov 126   ;;  %s1194_s14 = smov 124   ;;  %v401_v23 = vcombine.low %v619_v4, %v619_v4 }
   0x4   :  { %v1244_v9 = vld [vmem:[%s1596_s1] ss:$0 sps:$4 sm:$0x33]   ;;  %s1195_s15 = smov 88   ;;  %vm429_vm3 = vcmask 687104   ;;  %vm508_vm4 = vcmask 392192  }
   0x5   :  { %v1249_v10 = vld [vmem:[%s1596_s1] ss:$0 sps:$4 sm:$0x33]   ;;  %v1252_v11 = vsub.s32 %v72_v7, %v1239_v5  ;;  %vm586_vm5 = vcmask 375808   ;;  %vm207_vm6 = vcmask 1041408   ;;  %vm113_vm7 = vcmask 1031168  }
   0x6   :  { %1123 = vst.sshfl [vmem:[#allocation2 + $0x8] sm:$0xf pattern:$0x76325410] %v622_v6  ;;  %v717_v28 = vld [vmem:[%s1597_s3] sm:$0xff]  ;;  %vm193_vm8 = vcmask 1014784  }
   0x7   :  { %v1257_v12 = vld [vmem:[%s1596_s1] ss:$0 sps:$4 sm:$0x33]   ;;  %v629_v14 = vrot.slane %v618_v3, %v1252_v11  ;;  %v455_v16 = vrot.slane %v1244_v9, %v1252_v11  ;;  %v612_v17 = vrot.slane %v1249_v10, %v1252_v11  ;;  %v636_v18 = vrot.slane %v622_v6, %v1252_v11 }
   0x8   :  { %1125 = vst.sshfl [vmem:[#allocation2 + $0x18] sm:$0xf pattern:$0x76325410] %v637_v8  ;;  %v140_v19 = vrot.slane %v1257_v12, %v1252_v11  ;;  %v393_v21 = vrot.slane %v386_v15, %v1252_v11  ;;  %v644_v22 = vrot.slane %v619_v4, %v1252_v11  ;;  %v408_v24 = vrot.slane %v401_v23, %v1252_v11 }
   0x9   :  { %v1262_v13 = vld [vmem:[%s1596_s1] ss:$0 sps:$4 sm:$0x33]   ;;  %652 = vrot.lane.b32.xlu0 %v629_v14, %s1188_s8  ;;  %338 = vrot.lane.b32.xlu1 %v629_v14, %s1189_s9  ;;  %v651_v25 = vrot.slane %v637_v8, %v1252_v11  ;;  %vm1602_vm9 = vcmask 719872   ;;  %vm679_vm10 = vcmask 357380   ;;  %vm365_vm11 = vcmask 701444  }
   0xa   :  { %v298_v20 = vrot.slane %v1262_v13, %v1252_v11  ;;  %v1129_v27 = vld.sshfl [vmem:[%s1596_s1] sm:$0x3 pattern:$0x76325410]  ;;  %vm1440_vm12 = vmor %vm679_vm10, %vm207_vm6  ;;  %vm1603_vm13 = vcmask 293888   ;;  %vm127_vm15 = vcmask 1043458  }
   0xb   :  { %vm366_vm14 = vmor %vm365_vm11, %vm207_vm6  ;;  %vm443_vm10 = vcmask 687110  }
   0xc   :  { %vm1468_vm11 = vmor %vm443_vm10, %vm127_vm15  ;;  %vm1612_vm10 = vcmask 719872  }
   0xd   :  { %654 = vrot.lane.b32.xlu0 %v636_v18, %s1188_s8  ;;  %340 = vrot.lane.b32.xlu1 %v636_v18, %s1189_s9 }
  0x11   :  { %416 = vrot.lane.b32.xlu0 %v393_v21, %s1190_s10  ;;  %418 = vrot.lane.b32.xlu1 %v629_v14, %s1190_s10 }
  0x15   :  { %495 = vrot.lane.b32.xlu0 %v629_v14, %s1191_s11  ;;  %497 = vrot.lane.b32.xlu1 %v636_v18, %s1191_s11 }
  0x19   :  { %573 = vrot.lane.b32.xlu0 %v393_v21, %s1192_s12  ;;  %575 = vrot.lane.b32.xlu1 %v629_v14, %s1192_s12 }
  0x1d   :  { %656 = vrot.lane.b32.xlu0 %v644_v22, %s1188_s8  ;;  %99 = vrot.lane.b32.xlu1 %v393_v21, %s1193_s13 }
  0x21   :  { %101 = vrot.lane.b32.xlu0 %v629_v14, %s1193_s13  ;;  %180 = vrot.lane.b32.xlu1 %v629_v14, %s1194_s14 }
  0x25   :  { %182 = vrot.lane.b32.xlu0 %v636_v18, %s1194_s14  ;;  %259 = vrot.lane.b32.xlu1 %v393_v21, %s1195_s15 }
  0x29   :  { %261 = vrot.lane.b32.xlu0 %v629_v14, %s1195_s15  ;;  %342 = vrot.lane.b32.xlu1 %v644_v22, %s1189_s9 }
  0x2d   :  { %420 = vrot.lane.b32.xlu0 %v408_v24, %s1190_s10  ;;  %499 = vrot.lane.b32.xlu1 %v644_v22, %s1191_s11 }
  0x31   :  { %577 = vrot.lane.b32.xlu0 %v408_v24, %s1192_s12  ;;  %103 = vrot.lane.b32.xlu1 %v408_v24, %s1193_s13 }
  0x35   :  { %184 = vrot.lane.b32.xlu0 %v644_v22, %s1194_s14  ;;  %263 = vrot.lane.b32.xlu1 %v408_v24, %s1195_s15 }
  0x39   :  { %658 = vrot.lane.b32.xlu0 %v651_v25, %s1188_s8  ;;  %344 = vrot.lane.b32.xlu1 %v651_v25, %s1189_s9 }
  0x3d   :  { %422 = vrot.lane.b32.xlu0 %v644_v22, %s1190_s10  ;;  %501 = vrot.lane.b32.xlu1 %v651_v25, %s1191_s11 }
  0x41   :  { %579 = vrot.lane.b32.xlu0 %v644_v22, %s1192_s12  ;;  %105 = vrot.lane.b32.xlu1 %v644_v22, %s1193_s13 }
  0x45   :  { %186 = vrot.lane.b32.xlu0 %v651_v25, %s1194_s14  ;;  %265 = vrot.lane.b32.xlu1 %v644_v22, %s1195_s15 }
  0x49   :  { %691 = vrot.lane.b32.xlu0 %v1129_v27, %s1188_s8  ;;  %377 = vrot.lane.b32.xlu1 %v1129_v27, %s1189_s9 }
  0x4d   :  { %456 = vrot.lane.b32.xlu0 %v455_v16, %s1190_s10  ;;  %534 = vrot.lane.b32.xlu1 %v1129_v27, %s1191_s11 }
  0x51   :  { %613 = vrot.lane.b32.xlu0 %v612_v17, %s1192_s12  ;;  %141 = vrot.lane.b32.xlu1 %v140_v19, %s1193_s13 }
  0x55   :  { %220 = vrot.lane.b32.xlu0 %v1129_v27, %s1194_s14  ;;  %299 = vrot.lane.b32.xlu1 %v298_v20, %s1195_s15 }
  0x59   :  { %720 = vperm.xlu0 %1172, %v717_v28  }
  0x7b   :  { %v653_v29 = vpop.permute.xlu0 %652  ;;  %v339_v30 = vpop.permute.xlu1 %338 }
  0x7c   :  { %v660_v33 = vrot.slane %v653_v29, 4  ;;  %v346_v34 = vrot.slane %v339_v30, 4 }
  0x7f   :  { %v655_v31 = vpop.permute.xlu0 %654  ;;  %v1327_v32 = vpop.permute.xlu1 %340 }
  0x80   :  { %v661_v35 = vrot.slane %v655_v31, 4  ;;  %v347_v36 = vrot.slane %v1327_v32, 4 }
  0x82   :  { %v664_v37 = vsel %vm111_vm0, %v660_v33, %v661_v35  ;;  %v350_v38 = vsel %vm111_vm0, %v346_v34, %v347_v36 }
  0x83   :  { %v666_v39 = vsel %vm665_vm1, %v653_v29, %v664_v37  ;;  %v352_v40 = vsel %vm351_vm2, %v339_v30, %v350_v38  ;;  %v417_v41 = vpop.permute.xlu0 %416  ;;  %v1336_v42 = vpop.permute.xlu1 %418 }
  0x84   :  { %676 = vst [vmem:[#allocation2 + $0x80] sm:$0x33] %v666_v39  ;;  %362 = vst [vmem:[#allocation2 + $0x40] sm:$0x33] %v352_v40  ;;  %v424_v43 = vrot.slane %v417_v41, 4  ;;  %v425_v44 = vrot.slane %v1336_v42, 4 }
  0x86   :  { %v428_v45 = vsel %vm111_vm0, %v424_v43, %v425_v44 }
  0x87   :  { %v430_v46 = vsel %vm429_vm3, %v417_v41, %v428_v45  ;;  %v496_v47 = vpop.permute.xlu0 %495  ;;  %v1343_v48 = vpop.permute.xlu1 %497 }
  0x88   :  { %440 = vst [vmem:[#allocation2 + $0x40] sm:$0xcc] %v430_v46  ;;  %v503_v49 = vrot.slane %v496_v47, 4  ;;  %v504_v50 = vrot.slane %v1343_v48, 4 }
  0x8a   :  { %v507_v51 = vsel %vm111_vm0, %v503_v49, %v504_v50 }
  0x8b   :  { %v509_v52 = vsel %vm508_vm4, %v496_v47, %v507_v51  ;;  %v574_v53 = vpop.permute.xlu0 %573  ;;  %v1350_v54 = vpop.permute.xlu1 %575  ;;  %v713_v55 = vld [vmem:[#allocation2 + $0x80] sm:$0x33] }
  0x8c   :  { %519 = vst [vmem:[#allocation2 + $0x60] sm:$0x33] %v509_v52  ;;  %v581_v56 = vrot.slane %v574_v53, 4  ;;  %v582_v57 = vrot.slane %v1350_v54, 4  ;;  %v1147_v58 = vcombine.high %v713_v55, %v713_v55  ;;  %v1146_v59 = vcombine.low %v713_v55, %v713_v55 }
  0x8e   :  { %v585_v60 = vsel %vm111_vm0, %v581_v56, %v582_v57  ;;  %1154 = vmatprep.subr.msk.bf16.mxu0 %vm207_vm6, %v1147_v58  ;;  %v828_v61 = vsel %vm207_vm6, %v1146_v59, 0 }
  0x8f   :  { %v587_v62 = vsel %vm586_vm5, %v574_v53, %v585_v60  ;;  %862 = vmatpush1.bf16.msra.mxu0 %v828_v61  ;;  %v1359_v63 = vpop.permute.xlu0 %656  ;;  %v100_v1 = vpop.permute.xlu1 %99  ;;  %v705_v14 = vld [vmem:[#allocation2 + $0x40] sm:$0xff] }
  0x90   :  { %597 = vst [vmem:[#allocation2 + $0x60] sm:$0xcc] %v587_v62  ;;  %v662_v2 = vrot.slane %v1359_v63, 4  ;;  %v107_v8 = vrot.slane %v100_v1, 4 }
  0x92   :  { %v667_v3 = vsel %vm111_vm0, %v661_v35, %v662_v2 }
  0x93   :  { %v668_v4 = vsel %vm665_vm1, %v655_v31, %v667_v3  ;;  %v102_v6 = vpop.permute.xlu0 %101  ;;  %v181_v7 = vpop.permute.xlu1 %180 }
  0x94   :  { %677 = vst [vmem:[#allocation2 + $0x88] sm:$0x33] %v668_v4  ;;  %v108_v9 = vrot.slane %v102_v6, 4  ;;  %v188_v16 = vrot.slane %v181_v7, 4 }
  0x96   :  { %v112_v10 = vsel %vm111_vm0, %v107_v8, %v108_v9 }
  0x97   :  { %v114_v11 = vsel %vm113_vm7, %v100_v1, %v112_v10  ;;  %v1368_v12 = vpop.permute.xlu0 %182  ;;  %v260_v13 = vpop.permute.xlu1 %259  ;;  %v709_v15 = vld [vmem:[#allocation2 + $0x60] sm:$0xff] }
  0x98   :  { %124 = vst [vmem:[#allocation2] sm:$0xcc] %v114_v11  ;;  %v189_v17 = vrot.slane %v1368_v12, 4  ;;  %v1139_v18 = vcombine.high %v705_v14, %v709_v15  ;;  %v1138_v19 = vcombine.low %v705_v14, %v709_v15  ;;  %v267_v22 = vrot.slane %v260_v13, 4 }
  0x9a   :  { %v192_v20 = vsel %vm111_vm0, %v188_v16, %v189_v17  ;;  %863 = vmatprep.subr.bf16.mxu0 %v1139_v18 }
  0x9b   :  { %v194_v21 = vsel %vm193_vm8, %v181_v7, %v192_v20  ;;  %864 = vmatpush1.bf16.msra.mxu0 %v1138_v19  ;;  %v262_v23 = vpop.permute.xlu0 %261  ;;  %v1373_v24 = vpop.permute.xlu1 %342  ;;  %v714_v25 = vld [vmem:[#allocation2 + $0x88] sm:$0x33]  ;;  %v1447_v7 = vld [vmem:[%s1598_s2] sm:$0xf] }
  0x9c   :  { %204 = vst [vmem:[#allocation2 + $0x20] sm:$0x33] %v194_v21  ;;  %v268_v27 = vrot.slane %v262_v23, 4  ;;  %v348_v28 = vrot.slane %v1373_v24, 4  ;;  %v1149_v29 = vcombine.high %v714_v25, %v714_v25  ;;  %v1148_v30 = vcombine.low %v714_v25, %v714_v25 }
  0x9e   :  { %v271_v31 = vsel %vm111_vm0, %v267_v22, %v268_v27  ;;  %v353_v33 = vsel %vm111_vm0, %v347_v36, %v348_v28  ;;  %1156 = vmatprep.subr.msk.bf16.mxu1 %vm207_vm6, %v1149_v29  ;;  %v834_v34 = vsel %vm207_vm6, %v1148_v30, 0 }
  0x9f   :  { %v273_v35 = vsel %vm1602_vm9, %v260_v13, %v271_v31  ;;  %v354_v37 = vsel %vm351_vm2, %v1327_v32, %v353_v33  ;;  %903 = vmatpush1.bf16.msra.mxu1 %v834_v34  ;;  %v1387_v38 = vpop.permute.xlu0 %420  ;;  %v1389_v39 = vpop.permute.xlu1 %499  ;;  %v697_v55 = vld [vmem:[#allocation2] sm:$0xff] }
  0xa0   :  { %283 = vst [vmem:[#allocation2 + $0x20] sm:$0xcc] %v273_v35  ;;  %363 = vst [vmem:[#allocation2 + $0x48] sm:$0x33] %v354_v37  ;;  %v426_v40 = vrot.slane %v1387_v38, 4  ;;  %v505_v36 = vrot.slane %v1389_v39, 4 }
  0xa2   :  { %v431_v41 = vsel %vm111_vm0, %v425_v44, %v426_v40  ;;  %v510_v32 = vsel %vm111_vm0, %v504_v50, %v505_v36 }
  0xa3   :  { %v432_v43 = vsel %vm429_vm3, %v1336_v42, %v431_v41  ;;  %v511_v45 = vsel %vm508_vm4, %v1343_v48, %v510_v32  ;;  %v1407_v46 = vpop.permute.xlu0 %577  ;;  %v1409_v47 = vpop.permute.xlu1 %103 }
  0xa4   :  { %441 = vst [vmem:[#allocation2 + $0x48] sm:$0xcc] %v432_v43  ;;  %520 = vst [vmem:[#allocation2 + $0x68] sm:$0x33] %v511_v45  ;;  %v583_v44 = vrot.slane %v1407_v46, 4  ;;  %v109_v49 = vrot.slane %v1409_v47, 4 }
  0xa6   :  { %v588_v50 = vsel %vm111_vm0, %v582_v57, %v583_v44  ;;  %v115_v42 = vsel %vm111_vm0, %v108_v9, %v109_v49 }
  0xa7   :  { %v589_v48 = vsel %vm586_vm5, %v1350_v54, %v588_v50  ;;  %v116_v51 = vsel %vm113_vm7, %v102_v6, %v115_v42  ;;  %v1424_v52 = vpop.permute.xlu0 %184  ;;  %v1426_v53 = vpop.permute.xlu1 %263  ;;  %v701_v56 = vld [vmem:[#allocation2 + $0x20] sm:$0xff] }
  0xa8   :  { %598 = vst [vmem:[#allocation2 + $0x68] sm:$0xcc] %v589_v48  ;;  %125 = vst [vmem:[#allocation2 + $0x8] sm:$0xcc] %v116_v51  ;;  %v190_v57 = vrot.slane %v1424_v52, 4  ;;  %v269_v58 = vrot.slane %v1426_v53, 4  ;;  %v1131_v59 = vcombine.high %v697_v55, %v701_v56  ;;  %v1130_v60 = vcombine.low %v697_v55, %v701_v56 }
  0xaa   :  { %v195_v54 = vsel %vm111_vm0, %v189_v17, %v190_v57  ;;  %v274_v61 = vsel %vm111_vm0, %v268_v27, %v269_v58  ;;  %865 = vmatprep.subr.bf16.mxu0 %v1131_v59 }
  0xab   :  { %v196_v62 = vsel %vm193_vm8, %v1368_v12, %v195_v54  ;;  %v275_v1 = vsel %vm1602_vm9, %v262_v23, %v274_v61  ;;  %v659_v4 = vpop.permute.xlu0 %658  ;;  %v345_v6 = vpop.permute.xlu1 %344  ;;  %866 = vmatpush1.bf16.msra.mxu0 %v1130_v60  ;;  %vm522_vm9 = vcmask 390148   ;;  %v706_v18 = vld [vmem:[#allocation2 + $0x48] sm:$0xff] }
  0xac   :  { %205 = vst [vmem:[#allocation2 + $0x28] sm:$0x33] %v196_v62  ;;  %284 = vst [vmem:[#allocation2 + $0x28] sm:$0xcc] %v275_v1  ;;  %v663_v8 = vrot.slane %v659_v4, 4  ;;  %v349_v9 = vrot.slane %v345_v6, 4 }
  0xae   :  { %v669_v10 = vsel %vm111_vm0, %v662_v2, %v663_v8  ;;  %v671_v11 = vsel %vm665_vm1, %v659_v4, %v663_v8  ;;  %v355_v12 = vsel %vm111_vm0, %v348_v28, %v349_v9  ;;  %v357_v13 = vsel %vm351_vm2, %v345_v6, %v349_v9  ;;  %1155 = vmatmul.mubr.msk.bf16.vlgmr.msra.gmra.mxu0 %vm1603_vm13, %v1447_v7 }
  0xaf   :  { %v670_v14 = vsel %vm665_vm1, %v1359_v63, %v669_v10  ;;  %681 = vst.msk [vmem:[#allocation2 + $0x98] sm:$0x33] %vm1440_vm12, %v671_v11  ;;  %v356_v2 = vsel %vm351_vm2, %v1373_v24, %v355_v12  ;;  %v423_v16 = vpop.permute.xlu0 %422  ;;  %v502_v17 = vpop.permute.xlu1 %501  ;;  %v710_v19 = vld [vmem:[#allocation2 + $0x68] sm:$0xff]  ;;  %vm600_vm13 = vcmask 375814   ;;  %965 = vmatprep.mubr.bf16.mxu0 %v1196_v26  ;;  %vm523_vm1 = vmor %vm522_vm9, %vm207_vm6  ;;  %vm128_vm2 = vcmask 1031174  }
  0xb0   :  { %367 = vst.msk [vmem:[#allocation2 + $0x58] sm:$0x33] %vm366_vm14, %v357_v13  ;;  %678 = vst [vmem:[#allocation2 + $0x90] sm:$0x33] %v670_v14  ;;  %v427_v63 = vrot.slane %v423_v16, 4  ;;  %v506_v20 = vrot.slane %v502_v17, 4  ;;  %v1141_v21 = vcombine.high %v706_v18, %v710_v19  ;;  %v1140_v22 = vcombine.low %v706_v18, %v710_v19 }
  0xb1   :  { %364 = vst [vmem:[#allocation2 + $0x50] sm:$0x33] %v356_v2  ;;  %vm1491_vm9 = vmor %vm600_vm13, %vm127_vm15  ;;  %v698_v34 = vld [vmem:[#allocation2 + $0x8] sm:$0xff]  ;;  %vm208_vm12 = vcmask 1012740   ;;  %vm380_vm14 = vcmask 1042096  }
  0xb2   :  { %v433_v23 = vsel %vm111_vm0, %v426_v40, %v427_v63  ;;  %v435_v24 = vsel %vm429_vm3, %v423_v16, %v427_v63  ;;  %v512_v25 = vsel %vm111_vm0, %v505_v36, %v506_v20  ;;  %v514_v27 = vsel %vm508_vm4, %v502_v17, %v506_v20  ;;  %904 = vmatprep.subr.bf16.mxu1 %v1141_v21  ;;  %vm1513_vm13 = vmor %vm208_vm12, %vm207_vm6 }
  0xb3   :  { %v434_v28 = vsel %vm429_vm3, %v1387_v38, %v433_v23  ;;  %445 = vst.msk [vmem:[#allocation2 + $0x58] sm:$0xcc] %vm1468_vm11, %v435_v24  ;;  %v513_v29 = vsel %vm508_vm4, %v1389_v39, %v512_v25  ;;  %v580_v31 = vpop.permute.xlu0 %579  ;;  %905 = vmatpush1.bf16.msra.mxu1 %v1140_v22  ;;  %v106_v33 = vpop.permute.xlu1 %105  ;;  %v702_v35 = vld [vmem:[#allocation2 + $0x28] sm:$0xff]  ;;  %vm129_vm3 = vmor %vm128_vm2, %vm127_vm15  ;;  %vm286_vm4 = vcmask 719878   ;;  %vm537_vm11 = vcmask 1041792  }
  0xb4   :  { %524 = vst.msk [vmem:[#allocation2 + $0x78] sm:$0x33] %vm523_vm1, %v514_v27  ;;  %442 = vst [vmem:[#allocation2 + $0x50] sm:$0xcc] %v434_v28  ;;  %v584_v37 = vrot.slane %v580_v31, 4  ;;  %v110_v38 = vrot.slane %v106_v33, 4  ;;  %v1133_v39 = vcombine.high %v698_v34, %v702_v35  ;;  %v1132_v40 = vcombine.low %v698_v34, %v702_v35 }
  0xb5   :  { %521 = vst [vmem:[#allocation2 + $0x70] sm:$0x33] %v513_v29  ;;  %vm616_vm1 = vcmask 1043826   ;;  %vm144_vm2 = vcmask 1044466   ;;  %vm302_vm12 = vcmask 1044162  }
  0xb6   :  { %v590_v36 = vsel %vm111_vm0, %v583_v44, %v584_v37  ;;  %v592_v41 = vsel %vm586_vm5, %v580_v31, %v584_v37  ;;  %v117_v32 = vsel %vm111_vm0, %v109_v49, %v110_v38  ;;  %v119_v43 = vsel %vm113_vm7, %v106_v33, %v110_v38  ;;  %906 = vmatprep.subr.bf16.mxu1 %v1133_v39 }
  0xb7   :  { %v591_v45 = vsel %vm586_vm5, %v1407_v46, %v590_v36  ;;  %602 = vst.msk [vmem:[#allocation2 + $0x78] sm:$0xcc] %vm1491_vm9, %v592_v41  ;;  %v118_v50 = vsel %vm113_vm7, %v1409_v47, %v117_v32  ;;  %v187_v49 = vpop.permute.xlu0 %186  ;;  %v266_v42 = vpop.permute.xlu1 %265  ;;  %907 = vmatpush1.bf16.msra.mxu1 %v1132_v40  ;;  %v715_v48 = vld [vmem:[#allocation2 + $0x90] sm:$0x33]  ;;  %vm287_vm5 = vmor %vm286_vm4, %vm127_vm15  ;;  %vm694_vm7 = vcmask 1041760   ;;  %vm223_vm9 = vcmask 1042400  }
  0xb8   :  { %130 = vst.msk [vmem:[#allocation2 + $0x18] sm:$0xcc] %vm129_vm3, %v119_v43  ;;  %599 = vst [vmem:[#allocation2 + $0x70] sm:$0xcc] %v591_v45  ;;  %v191_v46 = vrot.slane %v187_v49, 4  ;;  %v270_v51 = vrot.slane %v266_v42, 4  ;;  %v1151_v55 = vcombine.high %v715_v48, %v715_v48  ;;  %v1150_v47 = vcombine.low %v715_v48, %v715_v48 }
  0xb9   :  { %126 = vst [vmem:[#allocation2 + $0x10] sm:$0xcc] %v118_v50  ;;  %vm1613_vm15 = vmmov %vm1612_vm10  ;;  %v1035_v39 = vsub.s32 0, %v1239_v5  ;;  %v1039_v40 = vsub.s32 1, %v1239_v5  ;;  %v1031_v36 = vld [vmem:[%s1600_s4] sm:$0xff] }
  0xba   :  { %v197_v56 = vsel %vm111_vm0, %v190_v57, %v191_v46  ;;  %v199_v59 = vsel %vm193_vm8, %v187_v49, %v191_v46  ;;  %v276_v60 = vsel %vm111_vm0, %v269_v58, %v270_v51  ;;  %v278_v54 = vsel %vm1612_vm10, %v266_v42, %v270_v51  ;;  %1158 = vmatprep.subr.msk.bf16.mxu0 %vm207_vm6, %v1151_v55 }
  0xbb   :  { %v198_v61 = vsel %vm193_vm8, %v1424_v52, %v197_v56  ;;  %210 = vst.msk [vmem:[#allocation2 + $0x38] sm:$0x33] %vm1513_vm13, %v199_v59  ;;  %v277_v62 = vsel %vm1613_vm15, %v1426_v53, %v276_v60  ;;  %v692_v57 = vpop.permute.xlu0 %691  ;;  %v378_v1 = vpop.permute.xlu1 %377  ;;  %v840_v3 = vsel %vm207_vm6, %v1150_v47, 0  ;;  %vm1614_vm0 = vcmask 293888   ;;  %v707_v58 = vld [vmem:[#allocation2 + $0x50] sm:$0xff] }
  0xbc   :  { %288 = vst.msk [vmem:[#allocation2 + $0x38] sm:$0xcc] %vm287_vm5, %v278_v54  ;;  %1157 = vmatmul.mubr.msk.bf16.vlgmr.msra.gmra.mxu1 %vm1614_vm0, %v1447_v7  ;;  %206 = vst [vmem:[#allocation2 + $0x30] sm:$0x33] %v198_v61  ;;  %944 = vmatpush1.bf16.msra.mxu0 %v840_v3  ;;  %vm459_vm8 = vcmask 1044130   ;;  %v1036_v50 = vrot.slane %v1031_v36, %v1035_v39  ;;  %v1040_v44 = vrot.slane %v1031_v36, %v1039_v40  ;;  %v1043_v42 = vsub.s32 2, %v1239_v5 }
  0xbd   :  { %285 = vst [vmem:[#allocation2 + $0x30] sm:$0xcc] %v277_v62  ;;  %695 = vst.msk [vmem:[#allocation2 + $0x9c] sm:$0x3] %vm694_vm7, %v692_v57  ;;  %1006 = vmatprep.mubr.bf16.mxu1 %v1196_v26  ;;  %v1047_v47 = vsub.s32 3, %v1239_v5  ;;  %v1051_v60 = vsub.s32 4, %v1239_v5 }
  0xbe   :  { %381 = vst.msk [vmem:[#allocation2 + $0x5c] sm:$0x3] %vm380_vm14, %v378_v1  ;;  %vm1615_vm3 = vmmov %vm1614_vm0  ;;  %v1044_v55 = vrot.slane %v1031_v36, %v1043_v42 }
  0xbf   :  { %v457_v52 = vpop.permute.xlu0 %456  ;;  %v535_v53 = vpop.permute.xlu1 %534  ;;  %v711_v4 = vld [vmem:[#allocation2 + $0x70] sm:$0xff]  ;;  %v1048_v61 = vrot.slane %v1031_v36, %v1047_v47 }
  0xc0   :  { %460 = vst.msk [vmem:[#allocation2 + $0x5c] sm:$0xc] %vm459_vm8, %v457_v52  ;;  %v1142_v6 = vcombine.low %v707_v58, %v711_v4  ;;  %v1143_v8 = vcombine.high %v707_v58, %v711_v4  ;;  %v699_v11 = vld [vmem:[#allocation2 + $0x10] sm:$0xff]  ;;  %v1052_v52 = vrot.slane %v1031_v36, %v1051_v60  ;;  %v1055_v58 = vsub.s32 5, %v1239_v5 }
  0xc1   :  { %538 = vst.msk [vmem:[#allocation2 + $0x7c] sm:$0x3] %vm537_vm11, %v535_v53 }
  0xc2   :  { %945 = vmatprep.subr.bf16.mxu0 %v1143_v8 }
  0xc3   :  { %v614_v9 = vpop.permute.xlu0 %613  ;;  %v142_v10 = vpop.permute.xlu1 %141  ;;  %946 = vmatpush1.bf16.msra.mxu0 %v1142_v6 }
  0xc4   :  { %v703_v12 = vld [vmem:[#allocation2 + $0x30] sm:$0xff]  ;;  %v716_v13 = vld [vmem:[#allocation2 + $0x98] sm:$0x33]  ;;  %617 = vst.msk [vmem:[#allocation2 + $0x7c] sm:$0xc] %vm616_vm1, %v614_v9 }
  0xc5   :  { %145 = vst.msk [vmem:[#allocation2 + $0x1c] sm:$0xc] %vm144_vm2, %v142_v10  ;;  %v1134_v26 = vcombine.low %v699_v11, %v703_v12  ;;  %v1135_v14 = vcombine.high %v699_v11, %v703_v12  ;;  %v1153_v2 = vcombine.high %v716_v13, %v716_v13  ;;  %v1152_v15 = vcombine.low %v716_v13, %v716_v13 }
  0xc7   :  { %947 = vmatprep.subr.bf16.mxu0 %v1135_v14  ;;  %1160 = vmatprep.subr.msk.bf16.mxu1 %vm207_vm6, %v1153_v2  ;;  %v846_v16 = vsel %vm207_vm6, %v1152_v15, 0  ;;  %v221_v17 = vpop.permute.xlu0 %220  ;;  %v300_v18 = vpop.permute.xlu1 %299  ;;  %v708_v19 = vld [vmem:[#allocation2 + $0x58] sm:$0xff]  ;;  %vm1616_vm6 = vmmov %vm1614_vm0  ;;  %v1056_v15 = vrot.slane %v1031_v36, %v1055_v58 }
  0xc8   :  { %948 = vmatpush1.bf16.msra.mxu0 %v1134_v26  ;;  %985 = vmatpush1.bf16.msra.mxu1 %v846_v16  ;;  %224 = vst.msk [vmem:[#allocation2 + $0x3c] sm:$0x3] %vm223_vm9, %v221_v17  ;;  %v1059_v17 = vsub.s32 6, %v1239_v5 }
  0xc9   :  { %303 = vst.msk [vmem:[#allocation2 + $0x3c] sm:$0xc] %vm302_vm12, %v300_v18  ;;  %v1063_v18 = vsub.s32 7, %v1239_v5 }
  0xcb   :  { %1159 = vmatmul.mubr.msk.bf16.vlgmr.msra.gmra.mxu0 %vm1615_vm3, %v1447_v7  ;;  %v712_v63 = vld [vmem:[#allocation2 + $0x78] sm:$0xff] }
  0xcc   :  { %v1144_v20 = vcombine.low %v708_v19, %v712_v63  ;;  %v1145_v21 = vcombine.high %v708_v19, %v712_v63  ;;  %v700_v22 = vld [vmem:[#allocation2 + $0x18] sm:$0xff] }
  0xce   :  { %986 = vmatprep.subr.bf16.mxu1 %v1145_v21 }
  0xcf   :  { %987 = vmatpush1.bf16.msra.mxu1 %v1144_v20 }
  0xd0   :  { %v704_v23 = vld [vmem:[#allocation2 + $0x38] sm:$0xff] }
  0xd1   :  { %v1136_v24 = vcombine.low %v700_v22, %v704_v23  ;;  %v1137_v25 = vcombine.high %v700_v22, %v704_v23  ;;  %v1060_v23 = vrot.slane %v1031_v36, %v1059_v17 }
  0xd3   :  { %988 = vmatprep.subr.bf16.mxu1 %v1137_v25 }
  0xd4   :  { %989 = vmatpush1.bf16.msra.mxu1 %v1136_v24  ;;  %v1546_v27 = vpop.permute.xlu0 %720 }
  0xd7   :  { %1161 = vmatmul.mubr.msk.bf16.vlgmr.msra.gmra.mxu1 %vm1616_vm6, %v1447_v7 }
 0x16e   :  { %v885_v28 = vpop.f32.mrf.mxu0 }
 0x16f   :  { %v886_v29 = vadd.f32 %v885_v28, %v1546_v27  ;;  %v1064_v28 = vrot.slane %v1031_v36, %v1063_v18 }
 0x170   :  { %v887_v30 = vpop.f32.mrf.mxu0 }
 0x171   :  { %v888_v31 = vadd.f32 %v887_v30, %v1546_v27  ;;  %v1015_v33 = vmax.f32 %v886_v29, 0.0 }
 0x172   :  { %v889_v34 = vpop.f32.mrf.mxu0 }
 0x173   :  { %v1016_v35 = vmax.f32 %v888_v31, 0.0  ;;  %1023 = vst [vmem:[%s1599_s5] sm:$0xff] %v1015_v33  ;;  %v1073_v46 = vmul.f32 %v1036_v50, %v1015_v33 }
 0x174   :  { %v890_v37 = vpop.f32.mrf.mxu0 }
 0x175   :  { %1024 = vst [vmem:[%s1599_s5 + $0x8] sm:$0xff] %v1016_v35  ;;  %v1074_v51 = vmul.f32 %v1040_v44, %v1016_v35  ;;  %v1090_v56 = vmul.f32 %v1073_v46, %v1015_v33 }
 0x177   :  { %v1091_v59 = vmul.f32 %v1074_v51, %v1016_v35  ;;  %v1081_v57 = vadd.f32 %v1074_v51, %v1073_v46 }
 0x179   :  { %v1098_v3 = vadd.f32 %v1091_v59, %v1090_v56 }
 0x17c   :  { %v926_v7 = vpop.f32.mrf.mxu1 }
 0x17d   :  { %v927_v38 = vadd.f32 %v926_v7, %v1546_v27 }
 0x17e   :  { %v928_v41 = vpop.f32.mrf.mxu1 }
 0x17f   :  { %v1017_v32 = vmax.f32 %v927_v38, 0.0  ;;  %v929_v43 = vadd.f32 %v928_v41, %v1546_v27 }
 0x180   :  { %v930_v45 = vpop.f32.mrf.mxu1 }
 0x181   :  { %1025 = vst [vmem:[%s1599_s5 + $0x10] sm:$0xff] %v1017_v32  ;;  %v1018_v49 = vmax.f32 %v929_v43, 0.0  ;;  %v1075_v54 = vmul.f32 %v1044_v55, %v1017_v32  ;;  %v1108_v45 = vand.u32 127, %v73_v0 }
 0x182   :  { %v931_v48 = vpop.f32.mrf.mxu1 }
 0x183   :  { %1026 = vst [vmem:[%s1599_s5 + $0x18] sm:$0xff] %v1018_v49  ;;  %v1092_v4 = vmul.f32 %v1075_v54, %v1017_v32  ;;  %v1076_v6 = vmul.f32 %v1048_v61, %v1018_v49  ;;  %v1082_v11 = vadd.f32 %v1081_v57, %v1075_v54  ;;  %vm1110_vm4 = vcmp.eq.s32.totalorder %v1108_v45, 1 }
 0x184   :  { %vm1109_vm13 = vcmp.eq.s32.totalorder %v1108_v45, 0 }
 0x185   :  { %v1099_v26 = vadd.f32 %v1098_v3, %v1092_v4  ;;  %v1093_v14 = vmul.f32 %v1076_v6, %v1018_v49  ;;  %v1083_v16 = vadd.f32 %v1082_v11, %v1076_v6 }
 0x187   :  { %v1100_v19 = vadd.f32 %v1099_v26, %v1093_v14 }
 0x18b   :  { %v967_v62 = vpop.f32.mrf.mxu0 }
 0x18c   :  { %v968_v1 = vadd.f32 %v967_v62, %v1546_v27 }
 0x18d   :  { %v969_v53 = vpop.f32.mrf.mxu0 }
 0x18e   :  { %v1019_v8 = vmax.f32 %v968_v1, 0.0  ;;  %v970_v9 = vadd.f32 %v969_v53, %v1546_v27 }
 0x18f   :  { %v971_v10 = vpop.f32.mrf.mxu0 }
 0x190   :  { %1027 = vst [vmem:[%s1599_s5 + $0x20] sm:$0xff] %v1019_v8  ;;  %v1020_v12 = vmax.f32 %v970_v9, 0.0  ;;  %v1077_v2 = vmul.f32 %v1052_v52, %v1019_v8 }
 0x191   :  { %v972_v13 = vpop.f32.mrf.mxu0 }
 0x192   :  { %1028 = vst [vmem:[%s1599_s5 + $0x28] sm:$0xff] %v1020_v12  ;;  %v1094_v63 = vmul.f32 %v1077_v2, %v1019_v8  ;;  %v1078_v20 = vmul.f32 %v1056_v15, %v1020_v12  ;;  %v1084_v24 = vadd.f32 %v1083_v16, %v1077_v2 }
 0x194   :  { %v1095_v29 = vmul.f32 %v1078_v20, %v1020_v12  ;;  %v1101_v33 = vadd.f32 %v1100_v19, %v1094_v63  ;;  %v1085_v37 = vadd.f32 %v1084_v24, %v1078_v20 }
 0x196   :  { %v1102_v36 = vadd.f32 %v1101_v33, %v1095_v29 }
 0x197   :  { %v1008_v21 = vpop.f32.mrf.mxu1 }
 0x198   :  { %v1009_v22 = vadd.f32 %v1008_v21, %v1546_v27 }
 0x199   :  { %v1010_v25 = vpop.f32.mrf.mxu1 }
 0x19a   :  { %v1021_v30 = vmax.f32 %v1009_v22, 0.0  ;;  %v1011_v31 = vadd.f32 %v1010_v25, %v1546_v27 }
 0x19b   :  { %v1012_v34 = vpop.f32.mrf.mxu1 }
 0x19c   :  { %1029 = vst [vmem:[%s1599_s5 + $0x30] sm:$0xff] %v1021_v30  ;;  %v1022_v5 = vmax.f32 %v1011_v31, 0.0  ;;  %v1079_v35 = vmul.f32 %v1060_v23, %v1021_v30 }
 0x19d   :  { %v1013_v7 = vpop.f32.mrf.mxu1 }
 0x19e   :  { %1030 = vst [vmem:[%s1599_s5 + $0x38] sm:$0xff] %v1022_v5  ;;  %v1080_v38 = vmul.f32 %v1064_v28, %v1022_v5  ;;  %v1086_v39 = vadd.f32 %v1085_v37, %v1079_v35  ;;  %v1096_v40 = vmul.f32 %v1079_v35, %v1021_v30 }
 0x1a0   :  { %v1087_v41 = vadd.f32 %v1086_v39, %v1080_v38  ;;  %v1097_v27 = vmul.f32 %v1080_v38, %v1022_v5  ;;  %v1103_v32 = vadd.f32 %v1102_v36, %v1096_v40 }
 0x1a2   :  { %1088 = vadd.xlane.f32.xlu0 %v1087_v41  ;;  %v1104_v43 = vadd.f32 %v1103_v32, %v1097_v27 }
 0x1a4   :  { %1105 = vadd.xlane.f32.xlu1 %v1104_v43 }
 0x22b   :  { %v1089_v44 = vpop.xlane.xlu0 %1088 }
 0x22d   :  { %v1106_v50 = vpop.xlane.xlu1 %1105 }
 0x22e   :  { %v1111_v49 = vsel %vm1110_vm4, %v1106_v50, 0.0 }
 0x22f   :  { %v1112_v42 = vsel %vm1109_vm13, %v1089_v44, %v1111_v49 }
 0x230   :  { %1113 = vst [vmem:[%s1601_s6] sm:$0xff] %v1112_v42 }

</bundles_post_ra>
